<compile_context>
chip_gen: v5e
topology: v5e:2x2
jax: 0.10.0
libtpu: 0.0.40
codegen_flags: <defaults>
</compile_context>

<pallas_src>
import jax
import jax.numpy as jnp
from jax.experimental import pallas as pl
from jax.experimental.pallas import tpu as pltpu

NEG_SLOPE = 0.01          # F.leaky_relu default negative_slope
IN_FEATURES = 13
HIGHEST = jax.lax.Precision.HIGHEST


def _leaky_relu(x):
    return jnp.where(x >= 0, x, NEG_SLOPE * x)


def mlp_kernel(x_ref,
               w1_ref, b1_ref,
               w2_ref, b2_ref,
               w3_ref, b3_ref,
               w4_ref, b4_ref,
               w5_ref, b5_ref,
               o_ref):
    x = x_ref[...]                                            # [TILE_B, 13]

    # Layer 1: contract feature axis of both operands -> [16, TILE_B] (batch on lanes).
    h = jnp.einsum("of,bf->ob", w1_ref[...], x,
                   preferred_element_type=jnp.float32,
                   precision=HIGHEST) + b1_ref[...]
    h = _leaky_relu(h)

    # 3 hidden layers: [16,16] @ [16,TILE_B] -> [16, TILE_B]
    for w_ref, b_ref in ((w2_ref, b2_ref), (w3_ref, b3_ref), (w4_ref, b4_ref)):
        h = jnp.dot(w_ref[...], h,
                    preferred_element_type=jnp.float32,
                    precision=HIGHEST) + b_ref[...]
        h = _leaky_relu(h)

    # Dropout(p=0.19): eval-mode semantics => identity.
    # TODO(synk): training-mode dropout (PRNG mask + 1/(1-p) scale) not implemented.

    # Output layer: [1,16] @ [16,TILE_B] -> [1, TILE_B] lane-dense store.
    out = jnp.dot(w5_ref[...], h,
                  preferred_element_type=jnp.float32,
                  precision=HIGHEST) + b5_ref[...]
    o_ref[...] = out.astype(o_ref.dtype)


def simple_nn_forward(x, params, *, tile_b=512):
    """x: [B, 13] float32; params: dict of PyTorch-layout weights. Returns [B, 1]."""
    B, F = x.shape
    assert F == IN_FEATURES, F
    num_tiles = pl.cdiv(B, tile_b)
    b_pad = num_tiles * tile_b
    if b_pad != B:
        x = jnp.pad(x, ((0, b_pad - B), (0, 0)))

    weight_keys = ("w1", "b1", "w2", "b2", "w3", "b3", "w4", "b4", "w5", "b5")
    weights = tuple(params[k] for k in weight_keys)

    def _resident_spec(shape):
        # Same block every grid step -> stays resident in VMEM (no per-step re-DMA).
        return pl.BlockSpec(shape, lambda i: (0, 0))

    in_specs = [pl.BlockSpec((tile_b, IN_FEATURES), lambda i: (i, 0))]
    in_specs += [_resident_spec(w.shape) for w in weights]

    flops = 2 * b_pad * (13 * 16 + 3 * 16 * 16 + 16)
    bytes_accessed = b_pad * (IN_FEATURES + 1) * 4 + sum(w.size for w in weights) * 4

    out = pl.pallas_call(
        mlp_kernel,
        out_shape=jax.ShapeDtypeStruct((1, b_pad), jnp.float32),
        grid=(num_tiles,),
        in_specs=in_specs,
        out_specs=pl.BlockSpec((1, tile_b), lambda i: (0, i)),
        compiler_params=pltpu.CompilerParams(
            dimension_semantics=("parallel",)),
        cost_estimate=pl.CostEstimate(
            flops=flops, transcendentals=0, bytes_accessed=bytes_accessed),
    )(x, *weights)

    # [1, b_pad] lane-dense slab -> [B, 1]
    return out.reshape(b_pad, 1)[:B]


def init_params(key, n_neurons=16, num_hidden_layers=3):
    """PyTorch nn.Linear-style init (uniform +/- 1/sqrt(fan_in)).
    Weights stored [out, in]; biases stored [out, 1]."""
    dims = [(n_neurons, IN_FEATURES)]
    dims += [(n_neurons, n_neurons)] * num_hidden_layers
    dims += [(1, n_neurons)]
    params = {}
    for i, (fan_out, fan_in) in enumerate(dims, start=1):
        key, kw, kb = jax.random.split(key, 3)
        bound = 1.0 / jnp.sqrt(jnp.float32(fan_in))
        params[f"w{i}"] = jax.random.uniform(
            kw, (fan_out, fan_in), jnp.float32, minval=-bound, maxval=bound)
        params[f"b{i}"] = jax.random.uniform(
            kb, (fan_out, 1), jnp.float32, minval=-bound, maxval=bound)
    return params


def _reference_forward(x, params):
    h = x
    for i in range(1, 5):
        h = jnp.dot(h, params[f"w{i}"].T, precision=HIGHEST) + params[f"b{i}"].T
        h = jnp.where(h >= 0, h, NEG_SLOPE * h)
    return jnp.dot(h, params["w5"].T, precision=HIGHEST) + params["b5"].T


if __name__ == "__main__":
    key = jax.random.PRNGKey(0)
    key, kx = jax.random.split(key)
    B = 300                       # non-multiple of the tile to exercise padding
    x = jax.random.normal(kx, (B, IN_FEATURES), jnp.float32)
    params = init_params(key, n_neurons=16)

    # Small tile in the test so the grid has several steps (exercises pipelining).
    out = simple_nn_forward(x, params, tile_b=128)
    out = jax.block_until_ready(out)

    ref = _reference_forward(x, params)
    assert out.shape == (B, 1), out.shape
    assert jnp.allclose(out, ref, atol=1e-4, rtol=1e-4), (
        float(jnp.max(jnp.abs(out - ref))))
    print("KERNEL_OK")
</pallas_src>

<mosaic_0001>
module attributes {stable_mosaic.version = 11 : i64} {
  func.func @mlp_kernel(%arg0: i32, %arg1: memref<128x13xf32, #tpu.memory_space<vmem>>, %arg2: memref<16x13xf32, #tpu.memory_space<vmem>>, %arg3: memref<16x1xf32, #tpu.memory_space<vmem>>, %arg4: memref<16x16xf32, #tpu.memory_space<vmem>>, %arg5: memref<16x1xf32, #tpu.memory_space<vmem>>, %arg6: memref<16x16xf32, #tpu.memory_space<vmem>>, %arg7: memref<16x1xf32, #tpu.memory_space<vmem>>, %arg8: memref<16x16xf32, #tpu.memory_space<vmem>>, %arg9: memref<16x1xf32, #tpu.memory_space<vmem>>, %arg10: memref<1x16xf32, #tpu.memory_space<vmem>>, %arg11: memref<1x1xf32, #tpu.memory_space<vmem>>, %arg12: memref<1x128xf32, #tpu.memory_space<vmem>>) attributes {dimension_semantics = [#tpu.dimension_semantics<parallel>], iteration_bounds = array<i64: 3>, scalar_prefetch = 0 : i64, scratch_operands = 0 : i64, tpu.core_type = #tpu.core_type<tc>, window_params = [{transform_indices = @transform_0, window_bounds = array<i64: 128, 13>}, {pipeline_mode = #tpu.pipeline_mode<synchronous>, transform_indices = @transform_1, window_bounds = array<i64: 16, 13>}, {pipeline_mode = #tpu.pipeline_mode<synchronous>, transform_indices = @transform_2, window_bounds = array<i64: 16, 1>}, {pipeline_mode = #tpu.pipeline_mode<synchronous>, transform_indices = @transform_3, window_bounds = array<i64: 16, 16>}, {pipeline_mode = #tpu.pipeline_mode<synchronous>, transform_indices = @transform_4, window_bounds = array<i64: 16, 1>}, {pipeline_mode = #tpu.pipeline_mode<synchronous>, transform_indices = @transform_5, window_bounds = array<i64: 16, 16>}, {pipeline_mode = #tpu.pipeline_mode<synchronous>, transform_indices = @transform_6, window_bounds = array<i64: 16, 1>}, {pipeline_mode = #tpu.pipeline_mode<synchronous>, transform_indices = @transform_7, window_bounds = array<i64: 16, 16>}, {pipeline_mode = #tpu.pipeline_mode<synchronous>, transform_indices = @transform_8, window_bounds = array<i64: 16, 1>}, {pipeline_mode = #tpu.pipeline_mode<synchronous>, transform_indices = @transform_9, window_bounds = array<i64: 1, 16>}, {pipeline_mode = #tpu.pipeline_mode<synchronous>, transform_indices = @transform_10, window_bounds = array<i64: 1, 1>}, {transform_indices = @transform_11, window_bounds = array<i64: 1, 128>}]} {
    %c0 = arith.constant 0 : index
    %c0_0 = arith.constant 0 : index
    %0 = vector.load %arg1[%c0, %c0_0] : memref<128x13xf32, #tpu.memory_space<vmem>>, vector<128x13xf32>
    %c0_1 = arith.constant 0 : index
    %c0_2 = arith.constant 0 : index
    %1 = vector.load %arg2[%c0_1, %c0_2] : memref<16x13xf32, #tpu.memory_space<vmem>>, vector<16x13xf32>
    "tpu.trace_start"() <{level = 10 : i32, message = "of,bf->ob"}> : () -> ()
    %cst = arith.constant dense<0.000000e+00> : vector<16x128xf32>
    %2 = tpu.matmul %1, %0, %cst {dimension_numbers = #tpu.dot_dimension_numbers<[1], [1], [0], [0], [0, 0, 1, 0], [], []>, precision = #tpu.contract_precision<fp32>} : vector<16x13xf32>, vector<128x13xf32>, vector<16x128xf32> -> vector<16x128xf32>
    "tpu.trace_stop"() : () -> ()
    %c0_3 = arith.constant 0 : index
    %c0_4 = arith.constant 0 : index
    %3 = vector.load %arg3[%c0_3, %c0_4] : memref<16x1xf32, #tpu.memory_space<vmem>>, vector<16x1xf32>
    %4 = vector.broadcast %3 : vector<16x1xf32> to vector<16x128xf32>
    %5 = arith.addf %2, %4 : vector<16x128xf32>
    %cst_5 = arith.constant 0.000000e+00 : f32
    %6 = vector.broadcast %cst_5 : f32 to vector<16x128xf32>
    %7 = arith.cmpf oge, %5, %6 : vector<16x128xf32>
    %cst_6 = arith.constant 0.00999999977 : f32
    %8 = vector.broadcast %cst_6 : f32 to vector<16x128xf32>
    %9 = arith.mulf %8, %5 : vector<16x128xf32>
    %10 = arith.select %7, %5, %9 : vector<16x128xi1>, vector<16x128xf32>
    %c0_7 = arith.constant 0 : index
    %c0_8 = arith.constant 0 : index
    %11 = vector.load %arg4[%c0_7, %c0_8] : memref<16x16xf32, #tpu.memory_space<vmem>>, vector<16x16xf32>
    %cst_9 = arith.constant dense<0.000000e+00> : vector<16x128xf32>
    %12 = tpu.matmul %11, %10, %cst_9 {dimension_numbers = #tpu.dot_dimension_numbers<[1], [0], [0], [1], [0, 0, 1, 1], [], []>, precision = #tpu.contract_precision<fp32>} : vector<16x16xf32>, vector<16x128xf32>, vector<16x128xf32> -> vector<16x128xf32>
    %c0_10 = arith.constant 0 : index
    %c0_11 = arith.constant 0 : index
    %13 = vector.load %arg5[%c0_10, %c0_11] : memref<16x1xf32, #tpu.memory_space<vmem>>, vector<16x1xf32>
    %14 = vector.broadcast %13 : vector<16x1xf32> to vector<16x128xf32>
    %15 = arith.addf %12, %14 : vector<16x128xf32>
    %cst_12 = arith.constant 0.000000e+00 : f32
    %16 = vector.broadcast %cst_12 : f32 to vector<16x128xf32>
    %17 = arith.cmpf oge, %15, %16 : vector<16x128xf32>
    %cst_13 = arith.constant 0.00999999977 : f32
    %18 = vector.broadcast %cst_13 : f32 to vector<16x128xf32>
    %19 = arith.mulf %18, %15 : vector<16x128xf32>
    %20 = arith.select %17, %15, %19 : vector<16x128xi1>, vector<16x128xf32>
    %c0_14 = arith.constant 0 : index
    %c0_15 = arith.constant 0 : index
    %21 = vector.load %arg6[%c0_14, %c0_15] : memref<16x16xf32, #tpu.memory_space<vmem>>, vector<16x16xf32>
    %cst_16 = arith.constant dense<0.000000e+00> : vector<16x128xf32>
    %22 = tpu.matmul %21, %20, %cst_16 {dimension_numbers = #tpu.dot_dimension_numbers<[1], [0], [0], [1], [0, 0, 1, 1], [], []>, precision = #tpu.contract_precision<fp32>} : vector<16x16xf32>, vector<16x128xf32>, vector<16x128xf32> -> vector<16x128xf32>
    %c0_17 = arith.constant 0 : index
    %c0_18 = arith.constant 0 : index
    %23 = vector.load %arg7[%c0_17, %c0_18] : memref<16x1xf32, #tpu.memory_space<vmem>>, vector<16x1xf32>
    %24 = vector.broadcast %23 : vector<16x1xf32> to vector<16x128xf32>
    %25 = arith.addf %22, %24 : vector<16x128xf32>
    %cst_19 = arith.constant 0.000000e+00 : f32
    %26 = vector.broadcast %cst_19 : f32 to vector<16x128xf32>
    %27 = arith.cmpf oge, %25, %26 : vector<16x128xf32>
    %cst_20 = arith.constant 0.00999999977 : f32
    %28 = vector.broadcast %cst_20 : f32 to vector<16x128xf32>
    %29 = arith.mulf %28, %25 : vector<16x128xf32>
    %30 = arith.select %27, %25, %29 : vector<16x128xi1>, vector<16x128xf32>
    %c0_21 = arith.constant 0 : index
    %c0_22 = arith.constant 0 : index
    %31 = vector.load %arg8[%c0_21, %c0_22] : memref<16x16xf32, #tpu.memory_space<vmem>>, vector<16x16xf32>
    %cst_23 = arith.constant dense<0.000000e+00> : vector<16x128xf32>
    %32 = tpu.matmul %31, %30, %cst_23 {dimension_numbers = #tpu.dot_dimension_numbers<[1], [0], [0], [1], [0, 0, 1, 1], [], []>, precision = #tpu.contract_precision<fp32>} : vector<16x16xf32>, vector<16x128xf32>, vector<16x128xf32> -> vector<16x128xf32>
    %c0_24 = arith.constant 0 : index
    %c0_25 = arith.constant 0 : index
    %33 = vector.load %arg9[%c0_24, %c0_25] : memref<16x1xf32, #tpu.memory_space<vmem>>, vector<16x1xf32>
    %34 = vector.broadcast %33 : vector<16x1xf32> to vector<16x128xf32>
    %35 = arith.addf %32, %34 : vector<16x128xf32>
    %cst_26 = arith.constant 0.000000e+00 : f32
    %36 = vector.broadcast %cst_26 : f32 to vector<16x128xf32>
    %37 = arith.cmpf oge, %35, %36 : vector<16x128xf32>
    %cst_27 = arith.constant 0.00999999977 : f32
    %38 = vector.broadcast %cst_27 : f32 to vector<16x128xf32>
    %39 = arith.mulf %38, %35 : vector<16x128xf32>
    %40 = arith.select %37, %35, %39 : vector<16x128xi1>, vector<16x128xf32>
    %c0_28 = arith.constant 0 : index
    %c0_29 = arith.constant 0 : index
    %41 = vector.load %arg10[%c0_28, %c0_29] : memref<1x16xf32, #tpu.memory_space<vmem>>, vector<1x16xf32>
    %cst_30 = arith.constant dense<0.000000e+00> : vector<1x128xf32>
    %42 = tpu.matmul %41, %40, %cst_30 {dimension_numbers = #tpu.dot_dimension_numbers<[1], [0], [0], [1], [0, 0, 1, 1], [], []>, precision = #tpu.contract_precision<fp32>} : vector<1x16xf32>, vector<16x128xf32>, vector<1x128xf32> -> vector<1x128xf32>
    %c0_31 = arith.constant 0 : index
    %c0_32 = arith.constant 0 : index
    %43 = vector.load %arg11[%c0_31, %c0_32] : memref<1x1xf32, #tpu.memory_space<vmem>>, vector<1x1xf32>
    %44 = vector.broadcast %43 : vector<1x1xf32> to vector<1x128xf32>
    %45 = arith.addf %42, %44 : vector<1x128xf32>
    %c0_33 = arith.constant 0 : index
    %c0_34 = arith.constant 0 : index
    %46 = vector.load %arg12[%c0_33, %c0_34] : memref<1x128xf32, #tpu.memory_space<vmem>>, vector<1x128xf32>
    tpu.vector_store %arg12[%c0_33, %c0_34], %45 {strides = array<i32>} : memref<1x128xf32, #tpu.memory_space<vmem>>, vector<1x128xf32>,
    return
  }
  func.func @transform_0(%arg0: i32) -> (i32, i32) {
    %c0_i32 = arith.constant 0 : i32
    %c0_i32_0 = arith.constant 0 : i32
    return %arg0, %c0_i32 : i32, i32
  }
  func.func @transform_1(%arg0: i32) -> (i32, i32) {
    %c0_i32 = arith.constant 0 : i32
    %c0_i32_0 = arith.constant 0 : i32
    %c0_i32_1 = arith.constant 0 : i32
    return %c0_i32, %c0_i32_0 : i32, i32
  }
  func.func @transform_2(%arg0: i32) -> (i32, i32) {
    %c0_i32 = arith.constant 0 : i32
    %c0_i32_0 = arith.constant 0 : i32
    %c0_i32_1 = arith.constant 0 : i32
    return %c0_i32, %c0_i32_0 : i32, i32
  }
  func.func @transform_3(%arg0: i32) -> (i32, i32) {
    %c0_i32 = arith.constant 0 : i32
    %c0_i32_0 = arith.constant 0 : i32
    %c0_i32_1 = arith.constant 0 : i32
    return %c0_i32, %c0_i32_0 : i32, i32
  }
  func.func @transform_4(%arg0: i32) -> (i32, i32) {
    %c0_i32 = arith.constant 0 : i32
    %c0_i32_0 = arith.constant 0 : i32
    %c0_i32_1 = arith.constant 0 : i32
    return %c0_i32, %c0_i32_0 : i32, i32
  }
  func.func @transform_5(%arg0: i32) -> (i32, i32) {
    %c0_i32 = arith.constant 0 : i32
    %c0_i32_0 = arith.constant 0 : i32
    %c0_i32_1 = arith.constant 0 : i32
    return %c0_i32, %c0_i32_0 : i32, i32
  }
  func.func @transform_6(%arg0: i32) -> (i32, i32) {
    %c0_i32 = arith.constant 0 : i32
    %c0_i32_0 = arith.constant 0 : i32
    %c0_i32_1 = arith.constant 0 : i32
    return %c0_i32, %c0_i32_0 : i32, i32
  }
  func.func @transform_7(%arg0: i32) -> (i32, i32) {
    %c0_i32 = arith.constant 0 : i32
    %c0_i32_0 = arith.constant 0 : i32
    %c0_i32_1 = arith.constant 0 : i32
    return %c0_i32, %c0_i32_0 : i32, i32
  }
  func.func @transform_8(%arg0: i32) -> (i32, i32) {
    %c0_i32 = arith.constant 0 : i32
    %c0_i32_0 = arith.constant 0 : i32
    %c0_i32_1 = arith.constant 0 : i32
    return %c0_i32, %c0_i32_0 : i32, i32
  }
  func.func @transform_9(%arg0: i32) -> (i32, i32) {
    %c0_i32 = arith.constant 0 : i32
    %c0_i32_0 = arith.constant 0 : i32
    %c0_i32_1 = arith.constant 0 : i32
    return %c0_i32, %c0_i32_0 : i32, i32
  }
  func.func @transform_10(%arg0: i32) -> (i32, i32) {
    %c0_i32 = arith.constant 0 : i32
    %c0_i32_0 = arith.constant 0 : i32
    %c0_i32_1 = arith.constant 0 : i32
    return %c0_i32, %c0_i32_0 : i32, i32
  }
  func.func @transform_11(%arg0: i32) -> (i32, i32) {
    %c0_i32 = arith.constant 0 : i32
    %c0_i32_0 = arith.constant 0 : i32
    return %c0_i32, %arg0 : i32, i32
  }
}

</mosaic_0001>

<bundles_post_ra>
// kernel: tpu_custom_call.1
= control target key start
LH: loop header
LB: loop body
LE: loop exit
PB: predicated region body
PF: predicated region fallthrough
CT: control target
= control target key end

     0   :  { %s2348_s0 = inlined_call_operand.vmem [shape: f32[384,13], index: 0, kind: input, shape index: {}]   ;;  %s2349_s1 = inlined_call_operand.vmem [shape: f32[16,13], index: 1, kind: input, shape index: {}]   ;;  %s2350_s2 = inlined_call_operand.vmem [shape: f32[16,1], index: 2, kind: input, shape index: {}]   ;;  %s2351_s3 = inlined_call_operand.vmem [shape: f32[16,16], index: 3, kind: input, shape index: {}]   ;;  %s2352_s4 = inlined_call_operand.vmem [shape: f32[16,1], index: 4, kind: input, shape index: {}]   ;;  %s2353_s5 = inlined_call_operand.vmem [shape: f32[16,16], index: 5, kind: input, shape index: {}]   ;;  %s2354_s6 = inlined_call_operand.vmem [shape: f32[16,1], index: 6, kind: input, shape index: {}]   ;;  %s2355_s7 = inlined_call_operand.vmem [shape: f32[16,16], index: 7, kind: input, shape index: {}]   ;;  %s2356_s8 = inlined_call_operand.vmem [shape: f32[16,1], index: 8, kind: input, shape index: {}]   ;;  %s2357_s9 = inlined_call_operand.vmem [shape: f32[1,16], index: 9, kind: input, shape index: {}]   ;;  %s2358_s10 = inlined_call_operand.<no memory space> [shape: f32[1,1], index: 10, kind: input, shape index: {}]   ;;  %s2359_s11 = inlined_call_operand.hbm [shape: f32[1,384], index: 11, kind: output, shape index: {}]  }
   0x1   :  { %2360 = sst [smem:[#allocation6_spill]] %s2348_s0  ;;  %v16_v0 = vstv %s2358_s10 }
   0x2   :  { %17 = vst [vmem:[#allocation2] sm:$0x1] %v16_v0 }
   0x3   :  { %18 = vsyncpa [#allocation4], 0 }
   0x4   :  { %20 = vsyncpa [#allocation4 + $0x1], 0  ;;  %s1918_s19 = smov 0   ;;  %s1920_s20 = smov 0  }
   0x5   :  { %s1922_s21 = smov 0   ;;  %s1924_s22 = smov 0  }
   0x6 LB: > { %s1939_s10 = sadd.s32 4294967295, %s1852_s22   ;;  %s1739_s23 = sadd.s32 4294967294, %s1852_s22   ;;  %s1852_s22 = sphi %s1924_s22, %s2367_s22   ;;  %s1848_s21 = sphi %s1922_s21, %s2366_s21   ;;  %s1844_s20 = sphi %s1920_s20, %s2365_s20   ;;  %s1840_s19 = sphi %s1918_s19, %s2364_s19  }
   0x7   : > { %s1943_s24 = sadd.s32 1, %s1852_s22   ;;  %s269_s25 = sadd.s32 1, %s1848_s21 }
   0x8   : > { %s266_s26 = ssub.s32 %s1852_s22, %s1943_s24  ;;  %p279_p0 = scmp.ne.s32.totalorder %s1848_s21, %s1844_s20 }
   0x9   : > { %p267_p1 = scmp.eq.s32.totalorder %s266_s26, 0  ;;  %p280_p2 = scmp.eq.s32.totalorder %s1939_s10, 2 }
   0xa   : > { %p285_p3 = scmp.ne.s32.totalorder %s1844_s20, %s1840_s19  ;;  %p286_p4 = scmp.eq.s32.totalorder %s1739_s23, 2 }
   0xb   : > { %s1954_s27 = scalar_select %p267_p1, %s1848_s21, %s269_s25  }
   0xc   : > { %p1956_p5 = por %p280_p2, %p279_p0  ;;  %p1960_p6 = por %p286_p4, %p285_p3 }
   0xd   : > { %p1742_p7 = scmp.ge.s32.totalorder %s1852_s22, 1  ;;  %p343_p8 = scmp.lt.s32.totalorder %s1852_s22, 4 }
   0xf   : > { %p344_p9 = pnand %p1742_p7, %p343_p8 }
  0x10   : > { %s1743_s30 = sshll.u32 (!%p344_p9), %s1939_s10, 4  ;;  %s2363_s0 = sld [smem:[#allocation6_spill]] (!%p344_p9) }
  0x11   : > { %347 = sbr.rel (%p344_p9) target bundleno = 997 (0x3e5), region = 64  ;;  %p383_p10 = scmp.lt.s32.totalorder (!%p344_p9), %s1743_s30, 47 }
  0x12   : > { %s380_s17 = sand.u32 (!%p344_p9), 1, %s1844_s20   ;;  %s1680_s25 = scalar_lea.hbm (!%p344_p9), %s2359_s11, %s1939_s10 }
  0x13   : > { %s381_s26 = scalar_lea.vmem (!%p344_p9), [#allocation3], %s380_s17  ;;  %s1672_s13 = scalar_lea.sflag (!%p344_p9), [#allocation4], %s380_s17 }
  0x14   : > { %s1810_s18 = scalar_lea.hbm (!%p344_p9), %s2359_s11, 3 }
  0x16   : > { %s2369_s30 = smov (!%p383_p10, %s1743_s30), 47  ;;  %vm418_vm0 = vcmask 105472   ;;  %vm865_vm1 = vcmask 130048  }
  0x17   : > { %s1744_s12 = sshll.u32 %s2369_s30, 3  ;;  %s1682_s30 = sshll.u32 %s381_s26, 4  ;;  %s1683_s30 = int_to_ptr.vmem [resolvable:$true] %s1682_s30 }
  0x18   : > { %s1970_s15 = scalar_lea.vmem %s2363_s0, %s1744_s12  ;;  %s1684_s12 = sshll.u32 %s1680_s25, 4  ;;  %s1685_s12 = int_to_ptr.hbm [resolvable:$true] %s1684_s12 }
  0x19   : > { %v403_v1 = vld [vmem:[%s1970_s15 + $0x78] sm:$0xff]  ;;  %v402_v2 = vld [vmem:[%s1970_s15 + $0x70] sm:$0xff]  ;;  %v401_v3 = vld [vmem:[%s1970_s15 + $0x68] sm:$0xff]  ;;  %s1804_s14 = sshra.s32 %s1685_s12, 4  ;;  %s1805_s14 = int_to_ptr.hbm [resolvable:$true] %s1804_s14 }
  0x1a   : > { %v471_v4 = vsel %vm418_vm0, %v403_v1, 0  ;;  %v468_v5 = vsel %vm418_vm0, %v402_v2, 0  ;;  %v465_v6 = vsel %vm418_vm0, %v401_v3, 0  ;;  %v400_v7 = vld [vmem:[%s1970_s15 + $0x60] sm:$0xff]  ;;  %v399_v8 = vld [vmem:[%s1970_s15 + $0x58] sm:$0xff]  ;;  %v398_v18 = vld [vmem:[%s1970_s15 + $0x50] sm:$0xff]  ;;  %p1811_p0 = scmp.lt.s32.totalorder %s1805_s14, %s2359_s11 }
  0x1b   : > { %v1980_v9 = vand.u32 4294901760, %v471_v4  ;;  %v1982_v10 = vand.u32 4294901760, %v468_v5  ;;  %v1984_v11 = vand.u32 4294901760, %v465_v6  ;;  %v462_v12 = vsel %vm418_vm0, %v400_v7, 0  ;;  %v397_v27 = vld [vmem:[%s1970_s15 + $0x48] sm:$0xff]  ;;  %v396_v35 = vld [vmem:[%s1970_s15 + $0x40] sm:$0xff] }
  0x1c   : > { %v1987_v13 = vand.u32 4294901760, %v462_v12  ;;  %v459_v16 = vsel %vm418_vm0, %v399_v8, 0  ;;  %v456_v22 = vsel %vm418_vm0, %v398_v18, 0  ;;  %v453_v30 = vsel %vm418_vm0, %v397_v27, 0  ;;  %v395_v42 = vld [vmem:[%s1970_s15 + $0x38] sm:$0xff]  ;;  %v394_v49 = vld [vmem:[%s1970_s15 + $0x30] sm:$0xff] }
  0x1d   : > { %474 = vmatpush.xpose.msra.mxu0 %v1980_v9  ;;  %v1991_v14 = vsub.f32 %v471_v4, %v1980_v9  ;;  %v1994_v15 = vsub.f32 %v468_v5, %v1982_v10  ;;  %v1998_v17 = vsub.f32 %v465_v6, %v1984_v11  ;;  %687 = vmatpush.xpose.msra.mxu3 %v1980_v9  ;;  %v2005_v21 = vand.u32 4294901760, %v459_v16  ;;  %v393_v56 = vld [vmem:[%s1970_s15 + $0x28] sm:$0xff]  ;;  %v392_v63 = vld [vmem:[%s1970_s15 + $0x20] sm:$0xff]  ;;  %v391_v6 = vld [vmem:[%s1970_s15 + $0x18] sm:$0xff] }
  0x1e   : > { %v2017_v26 = vsub.f32 %v462_v12, %v1987_v13  ;;  %v2022_v29 = vand.u32 4294901760, %v456_v22  ;;  %v2036_v36 = vand.u32 4294901760, %v453_v30  ;;  %v450_v41 = vsel %vm418_vm0, %v396_v35, 0  ;;  %v389_v35 = vld [vmem:[%s1970_s15 + $0x8] sm:$0xff] }
  0x1f   : > { %v524_v19 = vand.u32 4294901760, %v1991_v14  ;;  %v530_v20 = vand.u32 4294901760, %v1994_v15  ;;  %629 = vmatpush.xpose.msra.mxu2 %v1991_v14  ;;  %v536_v25 = vand.u32 4294901760, %v1998_v17  ;;  %v2031_v34 = vsub.f32 %v459_v16, %v2005_v21 }
  0x20   : > { %v542_v33 = vand.u32 4294901760, %v2017_v26  ;;  %v2039_v37 = vsub.f32 %v456_v22, %v2022_v29  ;;  %v2050_v43 = vand.u32 4294901760, %v450_v41  ;;  %v447_v47 = vsel %vm418_vm0, %v395_v42, 0 }
  0x21   : > { %476 = vmatpush.xpose.msra.mxu0 %v1982_v10  ;;  %v525_v23 = vsub.f32 %v1991_v14, %v524_v19  ;;  %v531_v24 = vsub.f32 %v1994_v15, %v530_v20  ;;  %689 = vmatpush.xpose.msra.mxu3 %v1982_v10  ;;  %v537_v32 = vsub.f32 %v1998_v17, %v536_v25  ;;  %v548_v40 = vand.u32 4294901760, %v2031_v34 }
  0x22   : > { %v543_v39 = vsub.f32 %v2017_v26, %v542_v33  ;;  %v554_v44 = vand.u32 4294901760, %v2039_v37  ;;  %v2059_v48 = vsub.f32 %v453_v30, %v2036_v36  ;;  %v2067_v51 = vand.u32 4294901760, %v447_v47 }
  0x23   : > { %v526_v28 = vand.u32 4294901760, %v525_v23  ;;  %632 = vmatpush.xpose.msra.mxu2 %v1994_v15  ;;  %v532_v31 = vand.u32 4294901760, %v531_v24  ;;  %v538_v38 = vand.u32 4294901760, %v537_v32  ;;  %v549_v46 = vsub.f32 %v2031_v34, %v548_v40  ;;  %v390_v23 = vld [vmem:[%s1970_s15 + $0x10] sm:$0xff]  ;;  %v405_v15 = vld [vmem:[%s2349_s1 + $0x8] sm:$0xff] }
  0x24   : > { %v544_v45 = vand.u32 4294901760, %v543_v39  ;;  %v555_v50 = vsub.f32 %v2039_v37, %v554_v44  ;;  %v560_v53 = vand.u32 4294901760, %v2059_v48  ;;  %v444_v54 = vsel %vm418_vm0, %v394_v49, 0 }
  0x25   : > { %478 = vmatpush.xpose.msra.mxu0 %v1984_v11  ;;  %527 = vmatpush.xpose.msra.mxu1 %v526_v28  ;;  %v550_v52 = vand.u32 4294901760, %v549_v46  ;;  %v2073_v55 = vsub.f32 %v450_v41, %v2050_v43  ;;  %v2078_v57 = vand.u32 4294901760, %v444_v54  ;;  %v441_v58 = vsel %vm418_vm0, %v393_v56, 0 }
  0x26   : > { %691 = vmatpush.xpose.msra.mxu3 %v1984_v11  ;;  %v556_v59 = vand.u32 4294901760, %v555_v50  ;;  %v561_v60 = vsub.f32 %v2059_v48, %v560_v53  ;;  %v2087_v62 = vsub.f32 %v447_v47, %v2067_v51  ;;  %v2092_v0 = vand.u32 4294901760, %v441_v58  ;;  %v388_v47 = vld [vmem:[%s1970_s15] sm:$0xff]  ;;  %s1806_s15 = scalar_lea.hbm %s1805_s14, 1 }
  0x27   : > { %635 = vmatpush.xpose.msra.mxu2 %v1998_v17  ;;  %v566_v61 = vand.u32 4294901760, %v2073_v55  ;;  %v438_v1 = vsel %vm418_vm0, %v392_v63, 0  ;;  %v2101_v5 = vsub.f32 %v444_v54, %v2078_v57  ;;  %v435_v22 = vsel %vm418_vm0, %v391_v6, 0  ;;  %p1807_p11 = scmp.ne.s32.totalorder %s1805_s14, %s1806_s15  ;;  %p1812_p1 = scmp.lt.s32.totalorder %s1810_s18, %s1806_s15 }
  0x28   : > { %v562_v2 = vand.u32 4294901760, %v561_v60  ;;  %v572_v4 = vand.u32 4294901760, %v2087_v62  ;;  %v2106_v7 = vand.u32 4294901760, %v438_v1  ;;  %v2114_v18 = vsub.f32 %v441_v58, %v2092_v0 }
  0x29   : > { %480 = vmatpush.xpose.msra.mxu0 %v1987_v13  ;;  %533 = vmatpush.xpose.msra.mxu1 %v532_v31  ;;  %v567_v3 = vsub.f32 %v2073_v55, %v566_v61  ;;  %v578_v16 = vand.u32 4294901760, %v2101_v5  ;;  %v2127_v30 = vand.u32 4294901760, %v435_v22  ;;  %v432_v32 = vsel %vm418_vm0, %v390_v23, 0  ;;  %p1808_p12 = pnand %p1807_p11, %p1956_p5  ;;  %p1813_p2 = por %p1812_p1, %p1811_p0 }
  0x2a   : > { %693 = vmatpush.xpose.msra.mxu3 %v1987_v13  ;;  %v573_v12 = vsub.f32 %v2087_v62, %v572_v4  ;;  %v2121_v24 = vsub.f32 %v438_v1, %v2106_v7  ;;  %v584_v31 = vand.u32 4294901760, %v2114_v18  ;;  %v2139_v42 = vand.u32 4294901760, %v432_v32 }
  0x2b   : > { %638 = vmatpush.xpose.msra.mxu2 %v2017_v26  ;;  %v568_v8 = vand.u32 4294901760, %v567_v3  ;;  %v579_v28 = vsub.f32 %v2101_v5, %v578_v16  ;;  %v429_v46 = vsel %vm418_vm0, %v389_v35, 0  ;;  %v426_v58 = vsel %vm418_vm0, %v388_v47, 0  ;;  %p1809_p13 = pneg %p1808_p12 }
  0x2c   : > { %v574_v27 = vand.u32 4294901760, %v573_v12  ;;  %v585_v41 = vsub.f32 %v2114_v18, %v584_v31  ;;  %v2156_v56 = vsub.f32 %v432_v32, %v2139_v42  ;;  %v2165_v63 = vand.u32 4294901760, %v426_v58 }
  0x2d   : > { %482 = vmatpush.xpose.msra.mxu0 %v2005_v21  ;;  %539 = vmatpush.xpose.msra.mxu1 %v538_v38  ;;  %v590_v38 = vand.u32 4294901760, %v2121_v24  ;;  %v580_v39 = vand.u32 4294901760, %v579_v28  ;;  %v1854_v26 = vmov 0   ;;  %p1814_p3 = pnand %p1813_p2, %p1809_p13 }
  0x2e   : > { %695 = vmatpush.xpose.msra.mxu3 %v2005_v21  ;;  %v586_v50 = vand.u32 4294901760, %v585_v41  ;;  %v602_v1 = vand.u32 4294901760, %v2156_v56  ;;  %v2179_v12 = vsub.f32 %v426_v58, %v2165_v63  ;;  %1787 = vset.pattern.permute.xlu0 %v1854_v26 }
  0x2f   : > { %641 = vmatpush.xpose.msra.mxu2 %v2031_v34  ;;  %v591_v49 = vsub.f32 %v2121_v24, %v590_v38  ;;  %1788 = vset.pattern.permute.xlu1 %v1854_v26 }
  0x30   : > { %v603_v6 = vsub.f32 %v2156_v56, %v602_v1  ;;  %1789 = vset.pattern.permute.xlu2 %v1854_v26 }
  0x31   : > { %484 = vmatpush.xpose.msra.mxu0 %v2022_v29  ;;  %545 = vmatpush.xpose.msra.mxu1 %v544_v45  ;;  %v2142_v45 = vsub.f32 %v435_v22, %v2127_v30 }
  0x32   : > { %697 = vmatpush.xpose.msra.mxu3 %v2022_v29  ;;  %v604_v22 = vand.u32 4294901760, %v603_v6 }
  0x33   : > { %644 = vmatpush.xpose.msra.mxu2 %v2039_v37  ;;  %v596_v54 = vand.u32 4294901760, %v2142_v45 }
  0x35   : > { %486 = vmatpush.xpose.msra.mxu0 %v2036_v36  ;;  %551 = vmatpush.xpose.msra.mxu1 %v550_v52  ;;  %v2152_v52 = vand.u32 4294901760, %v429_v46  ;;  %v597_v60 = vsub.f32 %v2142_v45, %v596_v54 }
  0x36   : > { %699 = vmatpush.xpose.msra.mxu3 %v2036_v36 }
  0x37   : > { %647 = vmatpush.xpose.msra.mxu2 %v2059_v48  ;;  %v598_v3 = vand.u32 4294901760, %v597_v60 }
  0x39   : > { %488 = vmatpush.xpose.msra.mxu0 %v2050_v43  ;;  %557 = vmatpush.xpose.msra.mxu1 %v556_v59  ;;  %v592_v59 = vand.u32 4294901760, %v591_v49 }
  0x3a   : > { %701 = vmatpush.xpose.msra.mxu3 %v2050_v43 }
  0x3b   : > { %650 = vmatpush.xpose.msra.mxu2 %v2073_v55 }
  0x3d   : > { %490 = vmatpush.xpose.msra.mxu0 %v2067_v51  ;;  %563 = vmatpush.xpose.msra.mxu1 %v562_v2  ;;  %v2169_v2 = vsub.f32 %v429_v46, %v2152_v52 }
  0x3e   : > { %703 = vmatpush.xpose.msra.mxu3 %v2067_v51 }
  0x3f   : > { %653 = vmatpush.xpose.msra.mxu2 %v2087_v62 }
  0x41   : > { %492 = vmatpush.xpose.msra.mxu0 %v2078_v57  ;;  %569 = vmatpush.xpose.msra.mxu1 %v568_v8  ;;  %v608_v8 = vand.u32 4294901760, %v2169_v2 }
  0x42   : > { %705 = vmatpush.xpose.msra.mxu3 %v2078_v57 }
  0x43   : > { %656 = vmatpush.xpose.msra.mxu2 %v2101_v5  ;;  %v609_v23 = vsub.f32 %v2169_v2, %v608_v8 }
  0x45   : > { %494 = vmatpush.xpose.msra.mxu0 %v2092_v0  ;;  %575 = vmatpush.xpose.msra.mxu1 %v574_v27  ;;  %v614_v27 = vand.u32 4294901760, %v2179_v12  ;;  %v610_v28 = vand.u32 4294901760, %v609_v23 }
  0x46   : > { %707 = vmatpush.xpose.msra.mxu3 %v2092_v0 }
  0x47   : > { %659 = vmatpush.xpose.msra.mxu2 %v2114_v18  ;;  %v615_v32 = vsub.f32 %v2179_v12, %v614_v27 }
  0x49   : > { %496 = vmatpush.xpose.msra.mxu0 %v2106_v7  ;;  %581 = vmatpush.xpose.msra.mxu1 %v580_v39  ;;  %v616_v35 = vand.u32 4294901760, %v615_v32  ;;  %v404_v39 = vld [vmem:[%s2349_s1] sm:$0xff] }
  0x4a   : > { %709 = vmatpush.xpose.msra.mxu3 %v2106_v7  ;;  %v420_v41 = vsel %vm418_vm0, %v404_v39, 0 }
  0x4b   : > { %662 = vmatpush.xpose.msra.mxu2 %v2121_v24  ;;  %v505_v46 = vand.u32 4294901760, %v420_v41 }
  0x4d   : > { %498 = vmatpush.xpose.msra.mxu0 %v2127_v30  ;;  %587 = vmatpush.xpose.msra.mxu1 %v586_v50  ;;  %v506_v47 = vsub.f32 %v420_v41, %v505_v46 }
  0x4e   : > { %711 = vmatpush.xpose.msra.mxu3 %v2127_v30 }
  0x4f   : > { %665 = vmatpush.xpose.msra.mxu2 %v2142_v45  ;;  %v507_v14 = vand.u32 4294901760, %v506_v47 }
  0x51   : > { %500 = vmatpush.xpose.msra.mxu0 %v2139_v42  ;;  %593 = vmatpush.xpose.msra.mxu1 %v592_v59 }
  0x52   : > { %713 = vmatpush.xpose.msra.mxu3 %v2139_v42 }
  0x53   : > { %668 = vmatpush.xpose.msra.mxu2 %v2156_v56 }
  0x55   : > { %502 = vmatpush.xpose.msra.mxu0 %v2152_v52  ;;  %599 = vmatpush.xpose.msra.mxu1 %v598_v3 }
  0x56   : > { %715 = vmatpush.xpose.msra.mxu3 %v2152_v52 }
  0x57   : > { %671 = vmatpush.xpose.msra.mxu2 %v2169_v2  ;;  %v853_v2 = vld [vmem:[%s2352_s4] sm:$0xff] }
  0x59   : > { %504 = vmatpush.xpose.msra.mxu0 %v2165_v63  ;;  %605 = vmatpush.xpose.msra.mxu1 %v604_v22 }
  0x5a   : > { %717 = vmatpush.xpose.msra.mxu3 %v2165_v63 }
  0x5b   : > { %674 = vmatpush.xpose.msra.mxu2 %v2179_v12 }
  0x5d   : > { %734 = vmatpush.xpose.msrb.mxu0 %v524_v19  ;;  %611 = vmatpush.xpose.msra.mxu1 %v610_v28  ;;  %v508_v19 = vsub.f32 %v506_v47, %v507_v14 }
  0x5e   : > { %677 = vmatmul.f32.vlgmr.msra.gmra.mxu2 %v506_v47  ;;  %721 = vmatmul.f32.vlgmr.msra.gmra.mxu3 %v507_v14 }
  0x5f   : > { %v509_v17 = vand.u32 4294901760, %v508_v19 }
  0x61   : > { %738 = vmatpush.xpose.msrb.mxu0 %v530_v20  ;;  %617 = vmatpush.xpose.msra.mxu1 %v616_v35  ;;  %v423_v20 = vsel %vm418_vm0, %v405_v15, 0 }
  0x62   : > { %510 = vmatmul.f32.vlgmr.msra.gmra.mxu0 %v509_v17 }
  0x64   : > { %619 = vmatmul.f32.vlgmr.msra.gmra.mxu1 %v505_v46 }
  0x65   : > { %742 = vmatpush.xpose.msrb.mxu0 %v536_v25  ;;  %805 = vmatpush.xpose.msrb.mxu1 %v1980_v9  ;;  %v513_v25 = vand.u32 4294901760, %v423_v20 }
  0x67   : > { %v514_v9 = vsub.f32 %v423_v20, %v513_v25 }
  0x69   : > { %746 = vmatpush.xpose.msrb.mxu0 %v542_v33  ;;  %807 = vmatpush.xpose.msrb.mxu1 %v1982_v10  ;;  %v515_v49 = vand.u32 4294901760, %v514_v9  ;;  %v407_v10 = vld [vmem:[%s2350_s2 + $0x8] sm:$0xff] }
  0x6a   : > { %682 = vmatmul.f32.gmra.mxu2 %v514_v9  ;;  %415 = vperm.xlu0 %1787, %v407_v10  }
  0x6b   : > { %v516_v50 = vsub.f32 %v514_v9, %v515_v49  ;;  %727 = vmatmul.f32.gmra.mxu3 %v515_v49  ;;  %v1286_v9 = vld [vmem:[%s2356_s8] sm:$0xff] }
  0x6c   : > { %623 = vmatmul.f32.gmra.mxu1 %v513_v25 }
  0x6d   : > { %750 = vmatpush.xpose.msrb.mxu0 %v548_v40  ;;  %809 = vmatpush.xpose.msrb.mxu1 %v1984_v11  ;;  %v517_v33 = vand.u32 4294901760, %v516_v50  ;;  %v406_v11 = vld [vmem:[%s2350_s2] sm:$0xff] }
  0x6f   : > { %518 = vmatmul.f32.gmra.mxu0 %v517_v33 }
  0x71   : > { %754 = vmatpush.xpose.msrb.mxu0 %v554_v44  ;;  %811 = vmatpush.xpose.msrb.mxu1 %v1987_v13  ;;  %v1287_v13 = vld [vmem:[%s2356_s8 + $0x8] sm:$0xff] }
  0x72   : > { %410 = vperm.xlu0 %1787, %v406_v11  }
  0x75   : > { %758 = vmatpush.xpose.msrb.mxu0 %v560_v53  ;;  %813 = vmatpush.xpose.msrb.mxu1 %v2005_v21 }
  0x79   : > { %762 = vmatpush.xpose.msrb.mxu0 %v566_v61  ;;  %815 = vmatpush.xpose.msrb.mxu1 %v2022_v29 }
  0x7a   : > { %1295 = vperm.xlu0 %1787, %v1287_v13  }
  0x7d   : > { %766 = vmatpush.xpose.msrb.mxu0 %v572_v4  ;;  %817 = vmatpush.xpose.msrb.mxu1 %v2036_v36 }
  0x81   : > { %770 = vmatpush.xpose.msrb.mxu0 %v578_v16  ;;  %819 = vmatpush.xpose.msrb.mxu1 %v2050_v43 }
  0x85   : > { %774 = vmatpush.xpose.msrb.mxu0 %v584_v31  ;;  %821 = vmatpush.xpose.msrb.mxu1 %v2067_v51  ;;  %v852_v31 = vld [vmem:[%s2351_s3 + $0x8] sm:$0xff] }
  0x86   : > { %v870_v56 = vsel %vm865_vm1, %v852_v31, 0 }
  0x89   : > { %778 = vmatpush.xpose.msrb.mxu0 %v590_v38  ;;  %823 = vmatpush.xpose.msrb.mxu1 %v2078_v57  ;;  %v851_v57 = vld [vmem:[%s2351_s3] sm:$0xff]  ;;  %v854_v38 = vld [vmem:[%s2352_s4 + $0x8] sm:$0xff] }
  0x8a   : > { %v867_v62 = vsel %vm865_vm1, %v851_v57, 0  ;;  %862 = vperm.xlu1 %1788, %v854_v38  }
  0x8b   : > { %v2265_v16 = vand.u32 4294901760, %v867_v62 }
  0x8d   : > { %782 = vmatpush.xpose.msrb.mxu0 %v596_v54  ;;  %825 = vmatpush.xpose.msrb.mxu1 %v2092_v0 }
  0x91   : > { %786 = vmatpush.xpose.msrb.mxu0 %v602_v1  ;;  %827 = vmatpush.xpose.msrb.mxu1 %v2106_v7  ;;  %v898_v1 = vand.u32 4294901760, %v870_v56 }
  0x92   : > { %857 = vperm.xlu1 %1788, %v853_v2  }
  0x93   : > { %v899_v23 = vsub.f32 %v870_v56, %v898_v1 }
  0x95   : > { %790 = vmatpush.xpose.msrb.mxu0 %v608_v8  ;;  %829 = vmatpush.xpose.msrb.mxu1 %v2127_v30  ;;  %v900_v39 = vand.u32 4294901760, %v899_v23 }
  0x97   : > { %v901_v14 = vsub.f32 %v899_v23, %v900_v39 }
  0x99   : > { %794 = vmatpush.xpose.msrb.mxu0 %v614_v27  ;;  %831 = vmatpush.xpose.msrb.mxu1 %v2139_v42  ;;  %v902_v17 = vand.u32 4294901760, %v901_v14 }
  0x9a   : > { %1290 = vperm.xlu1 %1788, %v1286_v9  }
  0x9c   : > { %796 = vmatmul.f32.vlgmr.msrb.gmra.mxu0 %v505_v46 }
  0x9d   : > { %833 = vmatpush.xpose.msrb.mxu1 %v2152_v52  ;;  %v891_v52 = vsub.f32 %v867_v62, %v2265_v16 }
  0xa1   : > { %835 = vmatpush.xpose.msrb.mxu1 %v2165_v63  ;;  %v892_v63 = vand.u32 4294901760, %v891_v52 }
  0xa3   : > { %v893_v22 = vsub.f32 %v891_v52, %v892_v63 }
  0xa4   : > { %800 = vmatmul.f32.gmra.mxu0 %v513_v25  ;;  %837 = vmatmul.f32.vlgmr.msrb.gmra.mxu1 %v505_v46 }
  0xa5   : > { %v894_v35 = vand.u32 4294901760, %v893_v22 }
  0xac   : > { %841 = vmatmul.f32.gmra.mxu1 %v513_v25 }
  0xdc   : > { %v416_v21 = vpop.permute.xlu0 %415 }
  0xdf   : > { %v511_v29 = vpop.f32.mrf.mxu0 }
  0xe1   : > { %v620_v34 = vpop.f32.mrf.mxu1  ;;  %v678_v43 = vpop.f32.mrf.mxu2 }
  0xe2   : > { %v722_v51 = vpop.f32.mrf.mxu3 }
  0xe4   : > { %v411_v36 = vpop.permute.xlu0 %410 }
  0xe5   : > { %v512_v40 = vadd.f32 %v511_v29, %v411_v36 }
  0xe7   : > { %v621_v44 = vadd.f32 %v620_v34, %v512_v40  ;;  %v1068_v40 = vld [vmem:[%s2353_s5] sm:$0xff] }
  0xe9   : > { %v624_v48 = vpop.f32.mrf.mxu1  ;;  %v679_v55 = vadd.f32 %v678_v43, %v621_v44 }
  0xeb   : > { %v723_v0 = vadd.f32 %v722_v51, %v679_v55 }
  0xec   : > { %v519_v37 = vpop.f32.mrf.mxu0 }
  0xed   : > { %v520_v53 = vadd.f32 %v519_v37, %v416_v21  ;;  %v683_v5 = vpop.f32.mrf.mxu2 }
  0xee   : > { %v728_v42 = vpop.f32.mrf.mxu3 }
  0xef   : > { %v625_v4 = vadd.f32 %v624_v48, %v520_v53  ;;  %v1083_v48 = vsel %vm865_vm1, %v1068_v40, 0 }
  0xf0   : > { %v2288_v57 = vand.u32 4294901760, %v1083_v48 }
  0xf1   : > { %v684_v24 = vadd.f32 %v683_v5, %v625_v4  ;;  %v1069_v4 = vld [vmem:[%s2353_s5 + $0x8] sm:$0xff] }
  0xf3   : > { %v729_v58 = vadd.f32 %v728_v42, %v684_v24  ;;  %v1086_v24 = vsel %vm865_vm1, %v1069_v4, 0 }
  0xfc   : > { %v863_v26 = vpop.permute.xlu1 %862 }
 0x104   : > { %v858_v29 = vpop.permute.xlu1 %857 }
 0x119   : > { %v797_v61 = vpop.f32.mrf.mxu0 }
 0x11a   : > { %v798_v7 = vadd.f32 %v797_v61, %v723_v0 }
 0x121   : > { %v838_v18 = vpop.f32.mrf.mxu1  ;;  %v801_v54 = vpop.f32.mrf.mxu0 }
 0x122   : > { %v839_v30 = vadd.f32 %v838_v18, %v798_v7  ;;  %v802_v60 = vadd.f32 %v801_v54, %v729_v58 }
 0x124   : > { %vm845_vm2 = vcmp.ge.f32.partialorder %v839_v30, 0.0  ;;  %v847_v45 = vmul.f32 0.01, %v839_v30 }
 0x126   : > { %v849_v59 = vsel %vm845_vm2, %v839_v30, %v847_v45  ;;  %v1114_v45 = vand.u32 4294901760, %v1086_v24 }
 0x127   : > { %v888_v3 = vand.u32 4294901760, %v849_v59 }
 0x129   : > { %v842_v6 = vpop.f32.mrf.mxu1  ;;  %v928_v27 = vsub.f32 %v849_v59, %v888_v3 }
 0x12a   : > { %v843_v8 = vadd.f32 %v842_v6, %v802_v60  ;;  %v1115_v60 = vsub.f32 %v1086_v24, %v1114_v45 }
 0x12b   : > { %v929_v46 = vand.u32 4294901760, %v928_v27 }
 0x12c   : > { %vm846_vm3 = vcmp.ge.f32.partialorder %v843_v8, 0.0  ;;  %v848_v12 = vmul.f32 0.01, %v843_v8  ;;  %v1116_v6 = vand.u32 4294901760, %v1115_v60 }
 0x12d   : > { %v930_v15 = vsub.f32 %v928_v27, %v929_v46 }
 0x12e   : > { %v850_v28 = vsel %vm846_vm3, %v843_v8, %v848_v12 }
 0x12f   : > { %v886_v32 = vand.u32 4294901760, %v850_v28  ;;  %v931_v25 = vand.u32 4294901760, %v930_v15 }
 0x131   : > { %v922_v41 = vsub.f32 %v850_v28, %v886_v32  ;;  %887 = vmatpush.msrb.mxu2 %v886_v32 }
 0x133   : > { %889 = vmatpush.msrb.mxu2 %v888_v3  ;;  %v923_v47 = vand.u32 4294901760, %v922_v41 }
 0x134   : > { %895 = vmatmul.f32.vlgmr.msrb.gmra.mxu2 %v894_v35 }
 0x135   : > { %958 = vmatpush.msra.mxu2 %v922_v41  ;;  %v924_v19 = vsub.f32 %v922_v41, %v923_v47 }
 0x137   : > { %961 = vmatpush.msra.mxu2 %v928_v27  ;;  %v925_v20 = vand.u32 4294901760, %v924_v19  ;;  %v1071_v27 = vld [vmem:[%s2354_s6 + $0x8] sm:$0xff] }
 0x138   : > { %1079 = vperm.xlu2 %1789, %v1071_v27  }
 0x139   : > { %1021 = vmatpush.msrb.mxu2 %v923_v47  ;;  %926 = vmatpush.msrb.mxu3 %v925_v20  ;;  %v1501_v47 = vld [vmem:[#allocation2] sm:$0x1] }
 0x13b   : > { %1025 = vmatpush.msrb.mxu2 %v929_v46  ;;  %932 = vmatpush.msrb.mxu3 %v931_v25  ;;  %v1070_v46 = vld [vmem:[%s2354_s6] sm:$0xff] }
 0x13c   : > { %903 = vmatmul.f32.gmra.mxu2 %v902_v17  ;;  %934 = vmatmul.f32.vlgmr.msrb.gmra.mxu3 %v2265_v16 }
 0x13d   : > { %988 = vmatpush.msra.mxu3 %v886_v32 }
 0x13f   : > { %990 = vmatpush.msra.mxu3 %v888_v3 }
 0x140   : > { %1074 = vperm.xlu2 %1789, %v1070_v46  }
 0x141   : > { %1050 = vmatpush.msrb.mxu3 %v886_v32 }
 0x143   : > { %1052 = vmatpush.msrb.mxu3 %v888_v3 }
 0x144   : > { %938 = vmatmul.f32.gmra.mxu3 %v898_v1  ;;  %964 = vmatmul.f32.vlgmr.msra.gmra.mxu2 %v891_v52 }
 0x148   : > { %1504 = vperm.xlu2 %1789, %v1501_v47  }
 0x14c   : > { %969 = vmatmul.f32.gmra.mxu2 %v899_v23  ;;  %994 = vmatmul.f32.vlgmr.msra.gmra.mxu3 %v892_v63  ;;  %v1117_v23 = vsub.f32 %v1115_v60, %v1116_v6 }
 0x154   : > { %1000 = vmatmul.f32.gmra.mxu3 %v900_v39  ;;  %1027 = vmatmul.f32.vlgmr.msrb.gmra.mxu2 %v2265_v16  ;;  %v1118_v39 = vand.u32 4294901760, %v1117_v23 }
 0x15c   : > { %1031 = vmatmul.f32.gmra.mxu2 %v898_v1  ;;  %1054 = vmatmul.f32.vlgmr.msrb.gmra.mxu3 %v2265_v16  ;;  %v1107_v16 = vsub.f32 %v1083_v48, %v2288_v57 }
 0x15e   : > { %v1108_v42 = vand.u32 4294901760, %v1107_v16 }
 0x160   : > { %v1109_v59 = vsub.f32 %v1107_v16, %v1108_v42 }
 0x162   : > { %v1110_v3 = vand.u32 4294901760, %v1109_v59 }
 0x164   : > { %1058 = vmatmul.f32.gmra.mxu3 %v898_v1 }
 0x192   : > { %v1080_v14 = vpop.permute.xlu2 %1079 }
 0x19a   : > { %v1075_v15 = vpop.permute.xlu2 %1074 }
 0x1b7   : > { %v896_v49 = vpop.f32.mrf.mxu2 }
 0x1b8   : > { %v897_v34 = vadd.f32 %v896_v49, %v858_v29 }
 0x1bf   : > { %v904_v50 = vpop.f32.mrf.mxu2  ;;  %v935_v10 = vpop.f32.mrf.mxu3 }
 0x1c0   : > { %v936_v37 = vadd.f32 %v935_v10, %v897_v34  ;;  %v905_v51 = vadd.f32 %v904_v50, %v863_v26 }
 0x1c7   : > { %v939_v33 = vpop.f32.mrf.mxu3  ;;  %v965_v11 = vpop.f32.mrf.mxu2 }
 0x1c8   : > { %v966_v44 = vadd.f32 %v965_v11, %v936_v37  ;;  %v940_v62 = vadd.f32 %v939_v33, %v905_v51  ;;  %v1284_v11 = vld [vmem:[%s2355_s7] sm:$0xff]  ;;  %v1285_v51 = vld [vmem:[%s2355_s7 + $0x8] sm:$0xff] }
 0x1cf   : > { %v970_v13 = vpop.f32.mrf.mxu2  ;;  %v995_v21 = vpop.f32.mrf.mxu3 }
 0x1d0   : > { %v996_v53 = vadd.f32 %v995_v21, %v966_v44  ;;  %v971_v5 = vadd.f32 %v970_v13, %v940_v62  ;;  %v1299_v21 = vsel %vm865_vm1, %v1284_v11, 0  ;;  %v1302_v62 = vsel %vm865_vm1, %v1285_v51, 0 }
 0x1d1   : > { %v1322_v40 = vand.u32 4294901760, %v1299_v21 }
 0x1d7   : > { %v1001_v36 = vpop.f32.mrf.mxu3  ;;  %v1028_v43 = vpop.f32.mrf.mxu2 }
 0x1d8   : > { %v1029_v55 = vadd.f32 %v1028_v43, %v996_v53  ;;  %v1002_v30 = vadd.f32 %v1001_v36, %v971_v5 }
 0x1df   : > { %v1055_v61 = vpop.f32.mrf.mxu3  ;;  %v1032_v18 = vpop.f32.mrf.mxu2 }
 0x1e0   : > { %v1056_v0 = vadd.f32 %v1055_v61, %v1029_v55  ;;  %v1033_v38 = vadd.f32 %v1032_v18, %v1002_v30 }
 0x1e2   : > { %vm1062_vm4 = vcmp.ge.f32.partialorder %v1056_v0, 0.0  ;;  %v1064_v7 = vmul.f32 0.01, %v1056_v0 }
 0x1e4   : > { %v1066_v31 = vsel %vm1062_vm4, %v1056_v0, %v1064_v7 }
 0x1e5   : > { %v1104_v52 = vand.u32 4294901760, %v1066_v31 }
 0x1e7   : > { %v1059_v54 = vpop.f32.mrf.mxu3  ;;  %v1144_v63 = vsub.f32 %v1066_v31, %v1104_v52 }
 0x1e8   : > { %v1060_v56 = vadd.f32 %v1059_v54, %v1033_v38 }
 0x1e9   : > { %v1145_v12 = vand.u32 4294901760, %v1144_v63 }
 0x1ea   : > { %vm1063_vm5 = vcmp.ge.f32.partialorder %v1060_v56, 0.0  ;;  %v1065_v58 = vmul.f32 0.01, %v1060_v56 }
 0x1eb   : > { %v1146_v32 = vsub.f32 %v1144_v63, %v1145_v12 }
 0x1ec   : > { %v1067_v1 = vsel %vm1063_vm5, %v1060_v56, %v1065_v58 }
 0x1ed   : > { %v1102_v2 = vand.u32 4294901760, %v1067_v1  ;;  %v1147_v41 = vand.u32 4294901760, %v1146_v32 }
 0x1ef   : > { %v1138_v8 = vsub.f32 %v1067_v1, %v1102_v2  ;;  %1103 = vmatpush.msra.mxu2 %v1102_v2  ;;  %1204 = vmatpush.msra.mxu1 %v1102_v2 }
 0x1f1   : > { %1105 = vmatpush.msra.mxu2 %v1104_v52  ;;  %1174 = vmatpush.msra.mxu0 %v1138_v8  ;;  %v1139_v22 = vand.u32 4294901760, %v1138_v8 }
 0x1f2   : > { %1206 = vmatpush.msra.mxu1 %v1104_v52  ;;  %1111 = vmatmul.f32.vlgmr.msra.gmra.mxu2 %v1110_v3 }
 0x1f3   : > { %1177 = vmatpush.msra.mxu0 %v1144_v63  ;;  %1237 = vmatpush.msrb.mxu2 %v1139_v22  ;;  %v1140_v28 = vsub.f32 %v1138_v8, %v1139_v22 }
 0x1f4   : > { %1180 = vmatmul.f32.vlgmr.msra.gmra.mxu0 %v1107_v16  ;;  %1210 = vmatmul.f32.vlgmr.msra.gmra.mxu1 %v1108_v42  ;;  %v1330_v16 = vand.u32 4294901760, %v1302_v62 }
 0x1f5   : > { %1241 = vmatpush.msrb.mxu2 %v1145_v12  ;;  %v1141_v35 = vand.u32 4294901760, %v1140_v28  ;;  %v1291_v28 = vpop.permute.xlu1 %1290 }
 0x1f6   : > { %v1331_v42 = vsub.f32 %v1302_v62, %v1330_v16 }
 0x1f7   : > { %1142 = vmatpush.msra.mxu3 %v1141_v35 }
 0x1f8   : > { %v1332_v58 = vand.u32 4294901760, %v1331_v42 }
 0x1f9   : > { %1148 = vmatpush.msra.mxu3 %v1147_v41 }
 0x1fa   : > { %1119 = vmatmul.f32.gmra.mxu2 %v1118_v39  ;;  %1150 = vmatmul.f32.vlgmr.msra.gmra.mxu3 %v2288_v57  ;;  %v1333_v1 = vsub.f32 %v1331_v42, %v1332_v58 }
 0x1fb   : > { %1266 = vmatpush.msrb.mxu3 %v1102_v2 }
 0x1fc   : > { %1185 = vmatmul.f32.gmra.mxu0 %v1115_v60  ;;  %1216 = vmatmul.f32.gmra.mxu1 %v1116_v6  ;;  %v1334_v8 = vand.u32 4294901760, %v1333_v1 }
 0x1fd   : > { %1268 = vmatpush.msrb.mxu3 %v1104_v52 }
 0x202   : > { %1154 = vmatmul.f32.gmra.mxu3 %v1114_v45  ;;  %1243 = vmatmul.f32.vlgmr.msrb.gmra.mxu2 %v2288_v57 }
 0x20a   : > { %1247 = vmatmul.f32.gmra.mxu2 %v1114_v45  ;;  %1270 = vmatmul.f32.vlgmr.msrb.gmra.mxu3 %v2288_v57  ;;  %v1323_v57 = vsub.f32 %v1299_v21, %v1322_v40 }
 0x20c   : > { %v1324_v7 = vand.u32 4294901760, %v1323_v57 }
 0x20e   : > { %v1325_v38 = vsub.f32 %v1323_v57, %v1324_v7 }
 0x210   : > { %v1326_v56 = vand.u32 4294901760, %v1325_v38 }
 0x212   : > { %1274 = vmatmul.f32.gmra.mxu3 %v1114_v45 }
 0x271   : > { %v1181_v9 = vpop.f32.mrf.mxu0  ;;  %v1211_v50 = vpop.f32.mrf.mxu1 }
 0x275   : > { %v1112_v19 = vpop.f32.mrf.mxu2 }
 0x276   : > { %v1113_v25 = vadd.f32 %v1112_v19, %v1075_v15  ;;  %v1296_v19 = vpop.permute.xlu0 %1295 }
 0x279   : > { %v1186_v36 = vpop.f32.mrf.mxu0  ;;  %v1217_v53 = vpop.f32.mrf.mxu1 }
 0x27d   : > { %v1120_v20 = vpop.f32.mrf.mxu2  ;;  %v1151_v17 = vpop.f32.mrf.mxu3 }
 0x27e   : > { %v1152_v49 = vadd.f32 %v1151_v17, %v1113_v25  ;;  %v1121_v26 = vadd.f32 %v1120_v20, %v1080_v14  ;;  %v1500_v14 = vld [vmem:[%s2357_s9] sm:$0x1] }
 0x27f   : > { %v1509_v17 = vsel %vm865_vm1, %v1500_v14, 0 }
 0x280   : > { %v1182_v33 = vadd.f32 %v1181_v9, %v1152_v49 }
 0x282   : > { %v1212_v29 = vadd.f32 %v1211_v50, %v1182_v33 }
 0x285   : > { %v1155_v10 = vpop.f32.mrf.mxu3  ;;  %v1244_v13 = vpop.f32.mrf.mxu2 }
 0x286   : > { %v1156_v34 = vadd.f32 %v1155_v10, %v1121_v26  ;;  %v1245_v37 = vadd.f32 %v1244_v13, %v1212_v29  ;;  %v1529_v10 = vand.u32 4294901760, %v1509_v17 }
 0x288   : > { %v1187_v44 = vadd.f32 %v1186_v36, %v1156_v34  ;;  %v1530_v29 = vsub.f32 %v1509_v17, %v1529_v10 }
 0x28a   : > { %v1218_v0 = vadd.f32 %v1217_v53, %v1187_v44 }
 0x28d   : > { %v1271_v43 = vpop.f32.mrf.mxu3  ;;  %v1248_v61 = vpop.f32.mrf.mxu2 }
 0x28e   : > { %v1272_v48 = vadd.f32 %v1271_v43, %v1245_v37  ;;  %v1249_v5 = vadd.f32 %v1248_v61, %v1218_v0  ;;  %v1531_v43 = vand.u32 4294901760, %v1530_v29 }
 0x290   : > { %vm1278_vm6 = vcmp.ge.f32.partialorder %v1272_v48, 0.0  ;;  %v1280_v55 = vmul.f32 0.01, %v1272_v48 }
 0x292   : > { %v1282_v4 = vsel %vm1278_vm6, %v1272_v48, %v1280_v55  ;;  %v1532_v55 = vsub.f32 %v1530_v29, %v1531_v43 }
 0x293   : > { %v1320_v18 = vand.u32 4294901760, %v1282_v4 }
 0x294   : > { %v1533_v0 = vand.u32 4294901760, %v1532_v55 }
 0x295   : > { %v1275_v24 = vpop.f32.mrf.mxu3  ;;  %v1360_v45 = vsub.f32 %v1282_v4, %v1320_v18 }
 0x296   : > { %v1276_v30 = vadd.f32 %v1275_v24, %v1249_v5 }
 0x297   : > { %v1361_v60 = vand.u32 4294901760, %v1360_v45 }
 0x298   : > { %vm1279_vm7 = vcmp.ge.f32.partialorder %v1276_v30, 0.0  ;;  %v1281_v31 = vmul.f32 0.01, %v1276_v30 }
 0x299   : > { %v1362_v3 = vsub.f32 %v1360_v45, %v1361_v60 }
 0x29a   : > { %v1283_v52 = vsel %vm1279_vm7, %v1276_v30, %v1281_v31  ;;  %v1505_v31 = vpop.permute.xlu2 %1504 }
 0x29b   : > { %v1318_v54 = vand.u32 4294901760, %v1283_v52  ;;  %v1363_v12 = vand.u32 4294901760, %v1362_v3 }
 0x29d   : > { %v1354_v59 = vsub.f32 %v1283_v52, %v1318_v54  ;;  %1319 = vmatpush.msrb.mxu0 %v1318_v54  ;;  %1420 = vmatpush.msra.mxu3 %v1318_v54 }
 0x29f   : > { %1321 = vmatpush.msrb.mxu0 %v1320_v18  ;;  %1390 = vmatpush.msra.mxu2 %v1354_v59  ;;  %v1355_v63 = vand.u32 4294901760, %v1354_v59 }
 0x2a0   : > { %1422 = vmatpush.msra.mxu3 %v1320_v18  ;;  %1327 = vmatmul.f32.vlgmr.msrb.gmra.mxu0 %v1326_v56 }
 0x2a1   : > { %1393 = vmatpush.msra.mxu2 %v1360_v45  ;;  %1453 = vmatpush.msra.mxu0 %v1355_v63  ;;  %v1356_v2 = vsub.f32 %v1354_v59, %v1355_v63 }
 0x2a2   : > { %1396 = vmatmul.f32.vlgmr.msra.gmra.mxu2 %v1323_v57  ;;  %1426 = vmatmul.f32.vlgmr.msra.gmra.mxu3 %v1324_v7 }
 0x2a3   : > { %1457 = vmatpush.msra.mxu0 %v1361_v60  ;;  %v1357_v6 = vand.u32 4294901760, %v1356_v2 }
 0x2a5   : > { %1358 = vmatpush.msrb.mxu1 %v1357_v6 }
 0x2a7   : > { %1364 = vmatpush.msrb.mxu1 %v1363_v12 }
 0x2a8   : > { %1335 = vmatmul.f32.gmra.mxu0 %v1334_v8  ;;  %1366 = vmatmul.f32.vlgmr.msrb.gmra.mxu1 %v1322_v40 }
 0x2a9   : > { %1482 = vmatpush.msra.mxu1 %v1318_v54 }
 0x2aa   : > { %1401 = vmatmul.f32.gmra.mxu2 %v1331_v42  ;;  %1432 = vmatmul.f32.gmra.mxu3 %v1332_v58  ;;  %v1507_v42 = vperm.slane %v1505_v31, 0 }
 0x2ab   : > { %1484 = vmatpush.msra.mxu1 %v1320_v18 }
 0x2b0   : > { %1370 = vmatmul.f32.gmra.mxu1 %v1330_v16  ;;  %1459 = vmatmul.f32.vlgmr.msra.gmra.mxu0 %v1322_v40 }
 0x2b8   : > { %1463 = vmatmul.f32.gmra.mxu0 %v1330_v16  ;;  %1486 = vmatmul.f32.vlgmr.msra.gmra.mxu1 %v1322_v40 }
 0x2c0   : > { %1490 = vmatmul.f32.gmra.mxu1 %v1330_v16 }
 0x31d   : > { %v1328_v22 = vpop.f32.mrf.mxu0 }
 0x31e   : > { %v1329_v32 = vadd.f32 %v1328_v22, %v1291_v28 }
 0x325   : > { %v1336_v23 = vpop.f32.mrf.mxu0  ;;  %v1367_v27 = vpop.f32.mrf.mxu1 }
 0x326   : > { %v1397_v35 = vpop.f32.mrf.mxu2  ;;  %v1368_v39 = vadd.f32 %v1367_v27, %v1329_v32  ;;  %v1427_v41 = vpop.f32.mrf.mxu3  ;;  %v1337_v20 = vadd.f32 %v1336_v23, %v1296_v19 }
 0x328   : > { %v1398_v47 = vadd.f32 %v1397_v35, %v1368_v39 }
 0x32a   : > { %v1428_v25 = vadd.f32 %v1427_v41, %v1398_v47 }
 0x32d   : > { %v1371_v46 = vpop.f32.mrf.mxu1  ;;  %v1460_v15 = vpop.f32.mrf.mxu0 }
 0x32e   : > { %v1372_v9 = vadd.f32 %v1371_v46, %v1337_v20  ;;  %v1402_v49 = vpop.f32.mrf.mxu2  ;;  %v1461_v50 = vadd.f32 %v1460_v15, %v1428_v25  ;;  %v1433_v13 = vpop.f32.mrf.mxu3 }
 0x330   : > { %v1403_v33 = vadd.f32 %v1402_v49, %v1372_v9 }
 0x332   : > { %v1434_v36 = vadd.f32 %v1433_v13, %v1403_v33 }
 0x335   : > { %v1487_v26 = vpop.f32.mrf.mxu1  ;;  %v1464_v34 = vpop.f32.mrf.mxu0 }
 0x336   : > { %v1488_v11 = vadd.f32 %v1487_v26, %v1461_v50  ;;  %v1465_v40 = vadd.f32 %v1464_v34, %v1434_v36 }
 0x338   : > { %vm1494_vm8 = vcmp.ge.f32.partialorder %v1488_v11, 0.0  ;;  %v1496_v21 = vmul.f32 0.01, %v1488_v11 }
 0x33a   : > { %v1498_v37 = vsel %vm1494_vm8, %v1488_v11, %v1496_v21 }
 0x33b   : > { %v1527_v44 = vand.u32 4294901760, %v1498_v37 }
 0x33d   : > { %v1491_v48 = vpop.f32.mrf.mxu1  ;;  %v1559_v57 = vsub.f32 %v1498_v37, %v1527_v44 }
 0x33e   : > { %v1492_v51 = vadd.f32 %v1491_v48, %v1465_v40 }
 0x33f   : > { %v1560_v5 = vand.u32 4294901760, %v1559_v57 }
 0x340   : > { %vm1495_vm9 = vcmp.ge.f32.partialorder %v1492_v51, 0.0  ;;  %v1497_v53 = vmul.f32 0.01, %v1492_v51 }
 0x341   : > { %v1561_v18 = vsub.f32 %v1559_v57, %v1560_v5 }
 0x342   : > { %v1499_v61 = vsel %vm1495_vm9, %v1492_v51, %v1497_v53 }
 0x343   : > { %v1525_v62 = vand.u32 4294901760, %v1499_v61  ;;  %v1562_v30 = vand.u32 4294901760, %v1561_v18 }
 0x345   : > { %v1553_v4 = vsub.f32 %v1499_v61, %v1525_v62  ;;  %1526 = vmatpush.msrb.mxu2 %v1525_v62  ;;  %1662 = vmatpush.msrb.mxu1 %v1525_v62 }
 0x347   : > { %1528 = vmatpush.msrb.mxu2 %v1527_v44  ;;  %1664 = vmatpush.msrb.mxu1 %v1527_v44  ;;  %v1554_v7 = vand.u32 4294901760, %v1553_v4 }
 0x348   : > { %1534 = vmatmul.f32.vlgmr.msrb.gmra.mxu2 %v1533_v0  ;;  %1666 = vmatmul.f32.vlgmr.msrb.gmra.mxu1 %v1529_v10 }
 0x349   : > { %1585 = vmatpush.msra.mxu2 %v1553_v4  ;;  %1637 = vmatpush.msrb.mxu0 %v1554_v7  ;;  %v1555_v16 = vsub.f32 %v1553_v4, %v1554_v7 }
 0x34b   : > { %1588 = vmatpush.msra.mxu2 %v1559_v57  ;;  %1641 = vmatpush.msrb.mxu0 %v1560_v5  ;;  %v1556_v24 = vand.u32 4294901760, %v1555_v16 }
 0x34c   : > { %1643 = vmatmul.f32.vlgmr.msrb.gmra.mxu0 %v1529_v10 }
 0x34d   : > { %1557 = vmatpush.msrb.mxu3 %v1556_v24 }
 0x34f   : > { %1563 = vmatpush.msrb.mxu3 %v1562_v30 }
 0x350   : > { %1565 = vmatmul.f32.vlgmr.msrb.gmra.mxu3 %v1529_v10  ;;  %1591 = vmatmul.f32.vlgmr.msra.gmra.mxu2 %v1530_v29 }
 0x351   : > { %1610 = vmatpush.msra.mxu3 %v1525_v62 }
 0x353   : > { %1612 = vmatpush.msra.mxu3 %v1527_v44 }
 0x358   : > { %1616 = vmatmul.f32.vlgmr.msra.gmra.mxu3 %v1531_v43 }
 0x3c5   : > { %v1667_v1 = vpop.f32.mrf.mxu1 }
 0x3c9   : > { %v1644_v60 = vpop.f32.mrf.mxu0 }
 0x3cb   : > { %v1535_v38 = vpop.f32.mrf.mxu2 }
 0x3cc   : > { %v1536_v52 = vadd.f32 %v1535_v38, %v1507_v42 }
 0x3d3   : > { %v1566_v45 = vpop.f32.mrf.mxu3  ;;  %v1592_v56 = vpop.f32.mrf.mxu2 }
 0x3d4   : > { %v1567_v54 = vadd.f32 %v1566_v45, %v1536_v52 }
 0x3d6   : > { %v1593_v58 = vadd.f32 %v1592_v56, %v1567_v54 }
 0x3db   : > { %v1617_v59 = vpop.f32.mrf.mxu3 }
 0x3dc   : > { %v1618_v63 = vadd.f32 %v1617_v59, %v1593_v58 }
 0x3de   : > { %v1645_v2 = vadd.f32 %v1644_v60, %v1618_v63 }
 0x3e0   : > { %v1668_v3 = vadd.f32 %v1667_v1, %v1645_v2 }
 0x3e2   : > { %1670 = vst [vmem:[%s381_s26] sm:$0x1] %v1668_v3 }
 0x3e3   : > { %1817 = shalt.err (!%p1814_p3)
}
 0x3e4   : > { %1747 = dma.vmem_to_hbm [thread:$0]  (%p1956_p5), %s1683_s30, 16, %s1685_s12, %s1672_s13  }
 0x3e5 PF: > { %p1753_p4 = scmp.ge.s32.totalorder %s1852_s22, 2  ;;  %s1696_s17 = sand.u32 1, %s1840_s19  }
 0x3e6   : > { %s1697_s25 = scalar_lea.sflag [#allocation4], %s1696_s17 }
 0x3e7   : > { %p1750_p7 = pnand %p1753_p4, %p1960_p6 }
 0x3e9   : > { %p1751_p8 = pneg %p1750_p7 }
 0x3eb   : > { %1835 = dma.done.wait (%p1751_p8), %s1697_s25, 16  }
 0x3ec   : > { %1837 = vsyncadd (%p1751_p8), %s1697_s25, 4294967280  ;;  %p23_p9 = scmp.ge.s32.totalorder %s1943_s24, 5   ;;  %s2364_s19 = smov %s1844_s20 }
 0x3ed   : > { %s2365_s20 = smov %s1848_s21  ;;  %s2366_s21 = smov %s1954_s27 }
 0x3ee   : > { %s2367_s22 = smov %s1943_s24  ;;  %25 = sbr.rel (!%p23_p9) target bundleno = 6 (0x6), region = 99 }
 0x3f3   :  { %1702 = vsyncpa [#allocation4], 1 }
 0x3f4   :  { %1704 = vsyncpa [#allocation4 + $0x1], 1 }

</bundles_post_ra>
